<compile_context>
chip_gen: v7x
topology: tpu7x:2x2x1
jax: 0.10.0
libtpu: 0.0.40
codegen_flags: <defaults>
</compile_context>

<pallas_src>
import jax
import jax.numpy as jnp
from jax.experimental import pallas as pl
from jax.experimental.pallas import tpu as pltpu


def _round_up(n, m):
    return ((n + m - 1) // m) * m


def _default_tile_n():
    """Rows per grid step, sized against per-generation VMEM.

    Per step VMEM ~= 2 (double buffer) * tile_n * (2B x-row + 4B label + 4B
    loss + 4B weight) plus a few KiB of resident folded weights, so 8K-16K
    rows is only a few MiB: inside v7x's 64 MiB physical / 32 MiB scoped VMEM,
    while v5e/v6e (128 MiB physical) can take the larger tile.
    """
    try:
        vmem_bytes = pltpu.get_tpu_info().vmem_capacity_bytes
    except Exception:  # interpret mode / older runtimes: be conservative
        vmem_bytes = 64 * 1024 * 1024
    return 8192 if vmem_bytes <= 64 * 1024 * 1024 else 16384


def _full_weight_kernel(x_ref, y_ref, loss_ref, emb_w1_ref, w1x_ref, b1_ref,
                        w2_ref, b2_ref, weight_ref, wloss_ref, lsum_ref):
    emb_w1 = emb_w1_ref[...]                      # (C, G), VMEM-resident
    tile_n = x_ref.shape[0]
    num_classes = emb_w1.shape[0]

    # Embedding gather: build the one-hot on the VPU from int32 labels and
    # contract it against the pre-folded (cls_emb @ W1[:E]) table on the MXU.
    onehot = (jax.lax.broadcasted_iota(jnp.int32, (tile_n, num_classes), 1)
              == y_ref[...]).astype(emb_w1.dtype)                     # (TILE_N, C)

    # z1 = concat([emb[y], x]) @ W1 + b1, with the concat folded away.
    z1 = (jnp.dot(onehot, emb_w1, preferred_element_type=jnp.float32)
          + jnp.dot(x_ref[...], w1x_ref[...], preferred_element_type=jnp.float32)
          + b1_ref[...])                                              # (TILE_N, G) f32

    a1 = jnp.maximum(z1, 0.0)          # Dropout is identity in eval; then ReLU.

    # Final G->1 layer as w2 (1,G) x a1 (TILE_N,G)^T: the result is produced
    # lane-dense (rows on lanes), avoiding a 1-lane-wide MXU column and making
    # the weight store an unmasked, full-lane vst.
    z2 = jax.lax.dot_general(
        w2_ref[...], a1,
        dimension_numbers=(((1,), (1,)), ((), ())),
        preferred_element_type=jnp.float32) + b2_ref[...]             # (1, TILE_N)
    w = jax.nn.sigmoid(z2)
    weight_ref[0] = w

    # Per-tile partial sums; zero-padded tail rows contribute 0 to both.
    loss_row = loss_ref[0]                                            # (1, TILE_N)
    wloss_ref[0] = jnp.sum(w * loss_row, axis=-1, keepdims=True)      # (1, 1)
    lsum_ref[0] = jnp.sum(loss_row, axis=-1, keepdims=True)           # (1, 1)


def full_weight_forward(x_feature, y_label, params, loss_s=None, *,
                        tile_n=None, use_bf16=True):
    """Pallas forward of FullWeightModel (eval mode, is_deeper_weight=False).

    Returns (mean(weight*loss_s), mean(loss_s), weight) if loss_s is given,
    else just weight -- matching the PyTorch module.
    """
    N, H = x_feature.shape
    C, E = params["cls_emb"].shape
    G = params["w1"].shape[1]

    if tile_n is None:
        tile_n = min(_default_tile_n(), _round_up(N, 128))
    tile_n = _round_up(tile_n, 128)          # lane-dense slabs, 8-aligned blocks
    num_tiles = pl.cdiv(N, tile_n)
    n_pad = num_tiles * tile_n

    mm_dtype = jnp.bfloat16 if use_bf16 else jnp.float32

    # Trace-time algebra:
    #   concat([emb[y], x]) @ W1 = onehot(y) @ (cls_emb @ W1[:E]) + x @ W1[E:]
    emb_w1 = (params["cls_emb"].astype(jnp.float32)
              @ params["w1"][:E].astype(jnp.float32)).astype(mm_dtype)   # (C, G)
    w1x = params["w1"][E:].astype(mm_dtype)                              # (H, G)
    b1 = params["b1"].reshape(1, G).astype(jnp.float32)
    w2_row = params["w2"].reshape(1, G).astype(jnp.float32)
    b2 = params["b2"].reshape(1, 1).astype(jnp.float32)

    x = x_feature.astype(mm_dtype)
    y = y_label.astype(jnp.int32).reshape(N, 1)
    loss_flat = (jnp.zeros((N,), jnp.float32) if loss_s is None
                 else loss_s.reshape(N).astype(jnp.float32))

    pad = n_pad - N
    if pad:
        x = jnp.pad(x, ((0, pad), (0, 0)))
        y = jnp.pad(y, ((0, pad), (0, 0)))
        loss_flat = jnp.pad(loss_flat, (0, pad))   # zeros drop out of both sums
    loss3 = loss_flat.reshape(num_tiles, 1, tile_n)

    const2d = lambda i: (0, 0)   # resident parameter tiles: never re-DMA'd

    out_shape = (
        jax.ShapeDtypeStruct((num_tiles, 1, tile_n), jnp.float32),  # weight (lane dense)
        jax.ShapeDtypeStruct((num_tiles, 1, 1), jnp.float32),       # per-tile sum(w*loss)
        jax.ShapeDtypeStruct((num_tiles, 1, 1), jnp.float32),       # per-tile sum(loss)
    )

    weight3, wloss_p, lsum_p = pl.pallas_call(
        _full_weight_kernel,
        out_shape=out_shape,
        grid=(num_tiles,),
        in_specs=[
            pl.BlockSpec((tile_n, H), lambda i: (i, 0)),        # x_feature
            pl.BlockSpec((tile_n, 1), lambda i: (i, 0)),        # y_label (int32)
            pl.BlockSpec((1, 1, tile_n), lambda i: (i, 0, 0)),  # loss_s (lane dense)
            pl.BlockSpec((C, G), const2d),                      # cls_emb @ W1[:E]
            pl.BlockSpec((H, G), const2d),                      # W1[E:]
            pl.BlockSpec((1, G), const2d),                      # b1
            pl.BlockSpec((1, G), const2d),                      # w2 as a row
            pl.BlockSpec((1, 1), const2d),                      # b2
        ],
        out_specs=(
            pl.BlockSpec((1, 1, tile_n), lambda i: (i, 0, 0)),
            pl.BlockSpec((1, 1, 1), lambda i: (i, 0, 0)),
            pl.BlockSpec((1, 1, 1), lambda i: (i, 0, 0)),
        ),
        compiler_params=pltpu.CompilerParams(
            # Per-tile partials keep grid steps independent -> truly parallel
            # (shards across v7x's two TensorCores; neutral on v5e/v6e).
            dimension_semantics=("parallel",),
            # v5e's default scoped VMEM is 16 MiB; raise it so large tiles
            # still double-buffer there (harmless on v6e/v7x).
            vmem_limit_bytes=32 * 1024 * 1024,
        ),
    )(x, y, loss3, emb_w1, w1x, b1, w2_row, b2)

    weight = weight3.reshape(n_pad, 1)[:N]
    if loss_s is None:
        return weight
    loss_weighted = jnp.sum(wloss_p) / N
    log_loss = jnp.sum(lsum_p) / N
    return loss_weighted, log_loss, weight


def _reference_forward(x_feature, y_label, params, loss_s, mm_dtype=jnp.float32):
    """Pure-JAX mirror of the PyTorch graph.

    mm_dtype controls the operand precision of the two big matmuls so the
    kernel's bf16 fast path can be checked tightly (accumulation stays f32).
    """
    E = params["cls_emb"].shape[1]
    G = params["w1"].shape[1]
    emb_w1 = (params["cls_emb"] @ params["w1"][:E]).astype(mm_dtype)
    w1x = params["w1"][E:].astype(mm_dtype)
    x = x_feature.astype(mm_dtype)
    z1 = (emb_w1[y_label].astype(jnp.float32)
          + jnp.dot(x, w1x, preferred_element_type=jnp.float32)
          + params["b1"].reshape(1, G))
    a1 = jnp.maximum(z1, 0.0)
    z2 = a1 @ params["w2"] + params["b2"].reshape(1, 1)
    weight = jax.nn.sigmoid(z2)
    loss2d = loss_s.reshape(-1, 1)
    return jnp.mean(weight * loss2d), jnp.mean(loss2d), weight


def init_params(key, class_num, hidden_size, cls_emb_dim, gw_hidden_dim):
    k_emb, k_w1, k_w2 = jax.random.split(key, 3)
    hidden_in = hidden_size + cls_emb_dim
    return {
        "cls_emb": jax.random.normal(k_emb, (class_num, cls_emb_dim), jnp.float32),
        "w1": jax.random.normal(k_w1, (hidden_in, gw_hidden_dim), jnp.float32)
              * (1.0 / jnp.sqrt(hidden_in)),
        "b1": jnp.zeros((gw_hidden_dim,), jnp.float32),
        "w2": jax.random.normal(k_w2, (gw_hidden_dim, 1), jnp.float32)
              * (1.0 / jnp.sqrt(gw_hidden_dim)),
        "b2": jnp.zeros((1,), jnp.float32),
    }


if __name__ == "__main__":
    # hparams: class_num=4, hidden_size=32, cls_emb_dim=16, gw_hidden_dim=32,
    # gw_dropout (identity in eval), is_deeper_weight=False.
    class_num, hidden_size, cls_emb_dim, gw_hidden_dim = 4, 32, 16, 32
    N = 300          # 3 grid steps of TILE_N=128, incl. a ragged zero-padded tail
    TILE_N = 128

    key = jax.random.PRNGKey(0)
    k_p, k_x, k_y, k_l = jax.random.split(key, 4)

    params = init_params(k_p, class_num, hidden_size, cls_emb_dim, gw_hidden_dim)
    x_feature = jax.random.normal(k_x, (N, hidden_size), jnp.float32)
    y_label = jax.random.randint(k_y, (N,), 0, class_num, jnp.int32)
    loss_s = jax.random.uniform(k_l, (N, 1), jnp.float32)

    loss_w, log_loss, weight = full_weight_forward(
        x_feature, y_label, params, loss_s, tile_n=TILE_N)
    jax.block_until_ready((loss_w, log_loss, weight))

    # loss_s=None path (module returns just the weights).
    weight_only = full_weight_forward(x_feature, y_label, params, None, tile_n=TILE_N)
    jax.block_until_ready(weight_only)

    # Tight check vs a reference with the same bf16 operand rounding, plus a
    # loose sanity check vs pure-f32 PyTorch-equivalent math.
    m_lw, m_ll, m_w = _reference_forward(x_feature, y_label, params, loss_s,
                                         mm_dtype=jnp.bfloat16)
    f_lw, f_ll, f_w = _reference_forward(x_feature, y_label, params, loss_s,
                                         mm_dtype=jnp.float32)

    assert weight.shape == (N, 1)
    assert weight_only.shape == (N, 1)
    assert jnp.allclose(weight, m_w, atol=2e-4, rtol=2e-4)
    assert jnp.allclose(loss_w, m_lw, atol=2e-4, rtol=2e-4)
    assert jnp.allclose(log_loss, m_ll, atol=2e-4, rtol=2e-4)
    assert jnp.allclose(weight_only, weight, atol=1e-6, rtol=1e-6)
    assert jnp.allclose(weight, f_w, atol=5e-2, rtol=5e-2)
    assert jnp.allclose(loss_w, f_lw, atol=5e-2, rtol=5e-2)

    print("KERNEL_OK")
</pallas_src>

<mosaic_0001>
module attributes {stable_mosaic.version = 11 : i64} {
  func.func @_full_weight_kernel(%arg0: i32, %arg1: memref<128x32xbf16, #tpu.memory_space<vmem>>, %arg2: memref<128x1xi32, #tpu.memory_space<vmem>>, %arg3: memref<1x1x128xf32, #tpu.memory_space<vmem>>, %arg4: memref<4x32xbf16, #tpu.memory_space<vmem>>, %arg5: memref<32x32xbf16, #tpu.memory_space<vmem>>, %arg6: memref<1x32xf32, #tpu.memory_space<vmem>>, %arg7: memref<1x32xf32, #tpu.memory_space<vmem>>, %arg8: memref<1x1xf32, #tpu.memory_space<vmem>>, %arg9: memref<1x1x128xf32, #tpu.memory_space<vmem>>, %arg10: memref<1x1x1xf32, #tpu.memory_space<vmem>>, %arg11: memref<1x1x1xf32, #tpu.memory_space<vmem>>) attributes {dimension_semantics = [#tpu.dimension_semantics<parallel>], iteration_bounds = array<i64: 3>, scalar_prefetch = 0 : i64, scratch_operands = 0 : i64, tpu.core_type = #tpu.core_type<tc>, window_params = [{transform_indices = @transform_0, window_bounds = array<i64: 128, 32>}, {transform_indices = @transform_1, window_bounds = array<i64: 128, 1>}, {transform_indices = @transform_2, window_bounds = array<i64: 1, 1, 128>}, {pipeline_mode = #tpu.pipeline_mode<synchronous>, transform_indices = @transform_3, window_bounds = array<i64: 4, 32>}, {pipeline_mode = #tpu.pipeline_mode<synchronous>, transform_indices = @transform_4, window_bounds = array<i64: 32, 32>}, {pipeline_mode = #tpu.pipeline_mode<synchronous>, transform_indices = @transform_5, window_bounds = array<i64: 1, 32>}, {pipeline_mode = #tpu.pipeline_mode<synchronous>, transform_indices = @transform_6, window_bounds = array<i64: 1, 32>}, {pipeline_mode = #tpu.pipeline_mode<synchronous>, transform_indices = @transform_7, window_bounds = array<i64: 1, 1>}, {transform_indices = @transform_8, window_bounds = array<i64: 1, 1, 128>}, {transform_indices = @transform_9, window_bounds = array<i64: 1, 1, 1>}, {transform_indices = @transform_10, window_bounds = array<i64: 1, 1, 1>}]} {
    %c0 = arith.constant 0 : index
    %c0_0 = arith.constant 0 : index
    %0 = vector.load %arg4[%c0, %c0_0] : memref<4x32xbf16, #tpu.memory_space<vmem>>, vector<4x32xbf16>
    %1 = tpu.iota {dimensions = array<i32: 1>} : vector<128x4xi32>
    %c0_1 = arith.constant 0 : index
    %c0_2 = arith.constant 0 : index
    %2 = vector.load %arg2[%c0_1, %c0_2] : memref<128x1xi32, #tpu.memory_space<vmem>>, vector<128x1xi32>
    %3 = vector.broadcast %2 : vector<128x1xi32> to vector<128x4xi32>
    %4 = arith.cmpi eq, %1, %3 : vector<128x4xi32>
    %5 = arith.extui %4 : vector<128x4xi1> to vector<128x4xi32>
    %6 = arith.sitofp %5 : vector<128x4xi32> to vector<128x4xf32>
    %7 = arith.truncf %6 : vector<128x4xf32> to vector<128x4xbf16>
    %cst = arith.constant dense<0.000000e+00> : vector<128x32xf32>
    %8 = tpu.matmul %7, %0, %cst {dimension_numbers = #tpu.dot_dimension_numbers<[1], [0], [0], [1], [0, 0, 1, 1], [], []>} : vector<128x4xbf16>, vector<4x32xbf16>, vector<128x32xf32> -> vector<128x32xf32>
    %c0_3 = arith.constant 0 : index
    %c0_4 = arith.constant 0 : index
    %9 = vector.load %arg1[%c0_3, %c0_4] : memref<128x32xbf16, #tpu.memory_space<vmem>>, vector<128x32xbf16>
    %c0_5 = arith.constant 0 : index
    %c0_6 = arith.constant 0 : index
    %10 = vector.load %arg5[%c0_5, %c0_6] : memref<32x32xbf16, #tpu.memory_space<vmem>>, vector<32x32xbf16>
    %cst_7 = arith.constant dense<0.000000e+00> : vector<128x32xf32>
    %11 = tpu.matmul %9, %10, %cst_7 {dimension_numbers = #tpu.dot_dimension_numbers<[1], [0], [0], [1], [0, 0, 1, 1], [], []>} : vector<128x32xbf16>, vector<32x32xbf16>, vector<128x32xf32> -> vector<128x32xf32>
    %12 = arith.addf %8, %11 : vector<128x32xf32>
    %c0_8 = arith.constant 0 : index
    %c0_9 = arith.constant 0 : index
    %13 = vector.load %arg6[%c0_8, %c0_9] : memref<1x32xf32, #tpu.memory_space<vmem>>, vector<1x32xf32>
    %14 = vector.broadcast %13 : vector<1x32xf32> to vector<128x32xf32>
    %15 = arith.addf %12, %14 : vector<128x32xf32>
    %cst_10 = arith.constant 0.000000e+00 : f32
    %16 = vector.broadcast %cst_10 : f32 to vector<128x32xf32>
    %17 = arith.maximumf %15, %16 : vector<128x32xf32>
    %c0_11 = arith.constant 0 : index
    %c0_12 = arith.constant 0 : index
    %18 = vector.load %arg7[%c0_11, %c0_12] : memref<1x32xf32, #tpu.memory_space<vmem>>, vector<1x32xf32>
    %cst_13 = arith.constant dense<0.000000e+00> : vector<1x128xf32>
    %19 = tpu.matmul %18, %17, %cst_13 {dimension_numbers = #tpu.dot_dimension_numbers<[1], [1], [0], [0], [0, 0, 1, 0], [], []>} : vector<1x32xf32>, vector<128x32xf32>, vector<1x128xf32> -> vector<1x128xf32>
    %c0_14 = arith.constant 0 : index
    %c0_15 = arith.constant 0 : index
    %20 = vector.load %arg8[%c0_14, %c0_15] : memref<1x1xf32, #tpu.memory_space<vmem>>, vector<1x1xf32>
    %21 = vector.broadcast %20 : vector<1x1xf32> to vector<1x128xf32>
    %22 = arith.addf %19, %21 : vector<1x128xf32>
    %23 = arith.negf %22 : vector<1x128xf32>
    %24 = math.exp %23 : vector<1x128xf32>
    %cst_16 = arith.constant 1.000000e+00 : f32
    %25 = vector.broadcast %cst_16 : f32 to vector<1x128xf32>
    %26 = arith.addf %25, %24 : vector<1x128xf32>
    %27 = arith.divf %25, %26 : vector<1x128xf32>
    %c0_17 = arith.constant 0 : index
    %c0_18 = arith.constant 0 : index
    %c0_19 = arith.constant 0 : index
    %28 = vector.load %arg9[%c0_17, %c0_18, %c0_19] : memref<1x1x128xf32, #tpu.memory_space<vmem>>, vector<1x1x128xf32>
    %29 = vector.shape_cast %28 : vector<1x1x128xf32> to vector<1x128xf32>
    %30 = vector.shape_cast %27 : vector<1x128xf32> to vector<1x1x128xf32>
    tpu.vector_store %arg9[%c0_17, %c0_18, %c0_19], %30 {strides = array<i32>} : memref<1x1x128xf32, #tpu.memory_space<vmem>>, vector<1x1x128xf32>,
    %c0_20 = arith.constant 0 : index
    %c0_21 = arith.constant 0 : index
    %c0_22 = arith.constant 0 : index
    %31 = vector.load %arg3[%c0_20, %c0_21, %c0_22] : memref<1x1x128xf32, #tpu.memory_space<vmem>>, vector<1x1x128xf32>
    %32 = vector.shape_cast %31 : vector<1x1x128xf32> to vector<1x128xf32>
    %33 = arith.mulf %27, %32 : vector<1x128xf32>
    %cst_23 = arith.constant dense<0.000000e+00> : vector<1xf32>
    %34 = vector.multi_reduction <add>, %33, %cst_23 [1] : vector<1x128xf32> to vector<1xf32>
    %35 = vector.shape_cast %34 : vector<1xf32> to vector<1x1xf32>
    %c0_24 = arith.constant 0 : index
    %c0_25 = arith.constant 0 : index
    %c0_26 = arith.constant 0 : index
    %36 = vector.load %arg10[%c0_24, %c0_25, %c0_26] : memref<1x1x1xf32, #tpu.memory_space<vmem>>, vector<1x1x1xf32>
    %37 = vector.shape_cast %36 : vector<1x1x1xf32> to vector<1x1xf32>
    %38 = vector.shape_cast %35 : vector<1x1xf32> to vector<1x1x1xf32>
    tpu.vector_store %arg10[%c0_24, %c0_25, %c0_26], %38 {strides = array<i32>} : memref<1x1x1xf32, #tpu.memory_space<vmem>>, vector<1x1x1xf32>,
    %cst_27 = arith.constant dense<0.000000e+00> : vector<1xf32>
    %39 = vector.multi_reduction <add>, %32, %cst_27 [1] : vector<1x128xf32> to vector<1xf32>
    %40 = vector.shape_cast %39 : vector<1xf32> to vector<1x1xf32>
    %c0_28 = arith.constant 0 : index
    %c0_29 = arith.constant 0 : index
    %c0_30 = arith.constant 0 : index
    %41 = vector.load %arg11[%c0_28, %c0_29, %c0_30] : memref<1x1x1xf32, #tpu.memory_space<vmem>>, vector<1x1x1xf32>
    %42 = vector.shape_cast %41 : vector<1x1x1xf32> to vector<1x1xf32>
    %43 = vector.shape_cast %40 : vector<1x1xf32> to vector<1x1x1xf32>
    tpu.vector_store %arg11[%c0_28, %c0_29, %c0_30], %43 {strides = array<i32>} : memref<1x1x1xf32, #tpu.memory_space<vmem>>, vector<1x1x1xf32>,
    return
  }
  func.func @transform_0(%arg0: i32) -> (i32, i32) {
    %c0_i32 = arith.constant 0 : i32
    %c0_i32_0 = arith.constant 0 : i32
    return %arg0, %c0_i32 : i32, i32
  }
  func.func @transform_1(%arg0: i32) -> (i32, i32) {
    %c0_i32 = arith.constant 0 : i32
    %c0_i32_0 = arith.constant 0 : i32
    return %arg0, %c0_i32 : i32, i32
  }
  func.func @transform_2(%arg0: i32) -> (i32, i32, i32) {
    %c0_i32 = arith.constant 0 : i32
    %c0_i32_0 = arith.constant 0 : i32
    %c0_i32_1 = arith.constant 0 : i32
    return %arg0, %c0_i32, %c0_i32_0 : i32, i32, i32
  }
  func.func @transform_3(%arg0: i32) -> (i32, i32) {
    %c0_i32 = arith.constant 0 : i32
    %c0_i32_0 = arith.constant 0 : i32
    %c0_i32_1 = arith.constant 0 : i32
    return %c0_i32, %c0_i32_0 : i32, i32
  }
  func.func @transform_4(%arg0: i32) -> (i32, i32) {
    %c0_i32 = arith.constant 0 : i32
    %c0_i32_0 = arith.constant 0 : i32
    %c0_i32_1 = arith.constant 0 : i32
    return %c0_i32, %c0_i32_0 : i32, i32
  }
  func.func @transform_5(%arg0: i32) -> (i32, i32) {
    %c0_i32 = arith.constant 0 : i32
    %c0_i32_0 = arith.constant 0 : i32
    %c0_i32_1 = arith.constant 0 : i32
    return %c0_i32, %c0_i32_0 : i32, i32
  }
  func.func @transform_6(%arg0: i32) -> (i32, i32) {
    %c0_i32 = arith.constant 0 : i32
    %c0_i32_0 = arith.constant 0 : i32
    %c0_i32_1 = arith.constant 0 : i32
    return %c0_i32, %c0_i32_0 : i32, i32
  }
  func.func @transform_7(%arg0: i32) -> (i32, i32) {
    %c0_i32 = arith.constant 0 : i32
    %c0_i32_0 = arith.constant 0 : i32
    %c0_i32_1 = arith.constant 0 : i32
    return %c0_i32, %c0_i32_0 : i32, i32
  }
  func.func @transform_8(%arg0: i32) -> (i32, i32, i32) {
    %c0_i32 = arith.constant 0 : i32
    %c0_i32_0 = arith.constant 0 : i32
    %c0_i32_1 = arith.constant 0 : i32
    return %arg0, %c0_i32, %c0_i32_0 : i32, i32, i32
  }
  func.func @transform_9(%arg0: i32) -> (i32, i32, i32) {
    %c0_i32 = arith.constant 0 : i32
    %c0_i32_0 = arith.constant 0 : i32
    %c0_i32_1 = arith.constant 0 : i32
    return %arg0, %c0_i32, %c0_i32_0 : i32, i32, i32
  }
  func.func @transform_10(%arg0: i32) -> (i32, i32, i32) {
    %c0_i32 = arith.constant 0 : i32
    %c0_i32_0 = arith.constant 0 : i32
    %c0_i32_1 = arith.constant 0 : i32
    return %arg0, %c0_i32, %c0_i32_0 : i32, i32, i32
  }
}

</mosaic_0001>

<bundles_post_ra>
// kernel: tpu_custom_call.1
= control target key start
LH: loop header
LB: loop body
LE: loop exit
PB: predicated region body
PF: predicated region fallthrough
CT: control target
= control target key end

     0   :  { %s1835_s0 = inlined_call_operand.vmem [shape: bf16[384,32], index: 0, kind: input, shape index: {}]   ;;  %s1836_s1 = inlined_call_operand.vmem [shape: s32[384,1], index: 1, kind: input, shape index: {}]   ;;  %s1837_s2 = inlined_call_operand.vmem [shape: f32[3,1,128], index: 2, kind: input, shape index: {}]   ;;  %s1838_s3 = inlined_call_operand.vmem [shape: bf16[4,32], index: 3, kind: input, shape index: {}]   ;;  %s1839_s4 = inlined_call_operand.vmem [shape: bf16[32,32], index: 4, kind: input, shape index: {}]   ;;  %s1840_s5 = inlined_call_operand.vmem [shape: f32[1,32], index: 5, kind: input, shape index: {}]   ;;  %s1841_s6 = inlined_call_operand.vmem [shape: f32[1,32], index: 6, kind: input, shape index: {}]   ;;  %s1842_s7 = inlined_call_operand.<no memory space> [shape: f32[1,1], index: 7, kind: input, shape index: {}]   ;;  %s1843_s8 = inlined_call_operand.hbm [shape: f32[3,1,128], index: 8, kind: output, shape index: {0}]   ;;  %s1844_s9 = inlined_call_operand.vmem [shape: f32[3,1,1], index: 9, kind: output, shape index: {1}]   ;;  %s1845_s10 = inlined_call_operand.vmem [shape: f32[3,1,1], index: 10, kind: output, shape index: {2}]  }
   0x1   :  { %1846 = sst [smem:[#allocation6_spill]] %s1835_s0  ;;  %v16_v0 = vstv %s1842_s7 }
   0x2   :  { %17 = vst [vmem:[#allocation2] sm:$0x1] %v16_v0 }
   0x3   :  { %18 = vsyncpa [#allocation4], 0 }
   0x4   :  { %20 = vsyncpa [#allocation4 + $0x1], 0  ;;  %s1603_s15 = smov 0   ;;  %s1605_s16 = smov 0  }
   0x5   :  { %s1607_s17 = smov 0   ;;  %s1609_s18 = smov 0  }
   0x6 LB: > { %s1624_s7 = sadd.s32 4294967295, %s1538_s18   ;;  %s1187_s19 = sadd.s32 4294967294, %s1538_s18   ;;  %s1538_s18 = sphi %s1609_s18, %s1855_s18   ;;  %s1534_s17 = sphi %s1607_s17, %s1854_s17   ;;  %s1530_s16 = sphi %s1605_s16, %s1853_s16   ;;  %s1526_s15 = sphi %s1603_s15, %s1852_s15  }
   0x7   : > { %s1628_s20 = sadd.s32 1, %s1538_s18   ;;  %s216_s21 = sadd.s32 1, %s1534_s17 }
   0x8   : > { %s213_s22 = ssub.s32 %s1538_s18, %s1628_s20  ;;  %p226_p0 = scmp.ne.s32.totalorder %s1534_s17, %s1530_s16 }
   0x9   : > { %p214_p1 = scmp.eq.s32.totalorder %s213_s22, 0  ;;  %p227_p2 = scmp.eq.s32.totalorder %s1624_s7, 2 }
   0xa   : > { %p232_p3 = scmp.ne.s32.totalorder %s1530_s16, %s1526_s15  ;;  %p233_p4 = scmp.eq.s32.totalorder %s1187_s19, 2 }
   0xb   : > { %s1639_s23 = scalar_select %p214_p1, %s1534_s17, %s216_s21  }
   0xc   : > { %p1641_p5 = por %p227_p2, %p226_p0  ;;  %p1645_p6 = por %p233_p4, %p232_p3 }
   0xd   : > { %p1190_p7 = scmp.ge.s32.totalorder %s1538_s18, 1  ;;  %p342_p8 = scmp.lt.s32.totalorder %s1538_s18, 4 }
   0xf   : > { %p343_p9 = pnand %p1190_p7, %p342_p8 }
  0x10   : > { %s1652_s26 = sshll.u32 (!%p343_p9), %s1624_s7, 4  ;;  %v1540_v1 = vmov (!%p343_p9), 0   ;;  %v1462_v2 = vld [vmem:[%s1839_s4] sm:$0xff] (!%p343_p9)   ;;  %v1463_v3 = vld [vmem:[%s1839_s4 + $0x8] sm:$0xff] (!%p343_p9)   ;;  %vm757_vm0 = vcmask (!%p343_p9), 1041408   ;;  %s1849_s0 = sld [smem:[#allocation6_spill]] (!%p343_p9)  ;;  %v416_v31 = vlaneseq (!%p343_p9) }
  0x11   : > { %346 = sbr.rel (%p343_p9) target bundleno = 836 (0x344), region = 52  ;;  %1461 = vset.pattern.permute.xlu1 (!%p343_p9), %v1540_v1  ;;  %1460 = vset.pattern.permute.xlu0 (!%p343_p9), %v1540_v1  ;;  %p394_p10 = scmp.lt.s32.totalorder (!%p343_p9), %s1652_s26, 47  ;;  %v415_v6 = vld [vmem:[%s1838_s3] sm:$0x3] (!%p343_p9)  ;;  %vm610_vm1 = vcmask (!%p343_p9), 261120   ;;  %vm732_vm6 = vcmask (!%p343_p9), 31744  }
  0x12   : > { %1295 = vmatprep.subr.bf16.mxu0 (!%p343_p9), %v1462_v2  ;;  %v759_v13 = vsel (!%p343_p9), %vm757_vm0, %v415_v6, 0  ;;  %v898_v29 = vld [vmem:[#allocation2] sm:$0x1] (!%p343_p9)  ;;  %v1710_v32 = vand.u32 (!%p343_p9), 127, %v416_v31  ;;  %v1541_v37 = vmov (!%p343_p9), 0.0   ;;  %p405_p11 = scmp.lt.s32.totalorder (!%p343_p9), %s1624_s7, 2 }
  0x13   : > { %1296 = vmatpush3.bf16.msra.mxu0 (!%p343_p9), %v1462_v2  ;;  %s381_s27 = sand.u32 (!%p343_p9), 1, %s1530_s16  }
  0x14   : > { %1297 = vmatprep.subr.bf16.mxu0 (!%p343_p9), %v1463_v3  ;;  %s382_s28 = scalar_lea.vmem (!%p343_p9), [#allocation3], %s381_s27 }
  0x17   : > { %1298 = vmatpush3.bf16.msra.mxu0 (!%p343_p9), %v1463_v3 }
  0x18   : > { %s395_s11 = scalar_select %p394_p10, %s1652_s26, 47  ;;  %1416 = vmatprep.subr.msk.bf16.mxu0 %vm757_vm0, %v415_v6 }
  0x19   : > { %s1857_s7 = smov (!%p405_p11, %s1624_s7), 2 }
  0x1a   : > { %s1194_s12 = sshll.u32 %s395_s11, 3  ;;  %s1192_s21 = sshll.u32 %s395_s11, 2 }
  0x1b   : > { %s1665_s19 = scalar_lea.vmem %s1836_s1, %s1194_s12  ;;  %s1677_s30 = scalar_lea.vmem %s1849_s0, %s1192_s21 }
  0x1c   : > { %v420_v4 = vld [vmem:[%s1665_s19 + $0x10] sm:$0xff]  ;;  %v418_v5 = vld [vmem:[%s1665_s19] sm:$0xff]  ;;  %v421_v7 = vld [vmem:[%s1665_s19 + $0x18] sm:$0xff]  ;;  %s407_s22 = scalar_lea.vmem %s1837_s2, %s1857_s7  ;;  %s413_s11 = scalar_lea.vmem %s1845_s10, %s1857_s7 }
  0x1d   : > { %441 = vperm.xlu1 %1461, %v420_v4   ;;  %435 = vperm.xlu0 %1460, %v418_v5   ;;  %v419_v8 = vld [vmem:[%s1665_s19 + $0x8] sm:$0xff]  ;;  %v422_v10 = vld [vmem:[%s1665_s19 + $0x20] sm:$0xff]  ;;  %v1466_v14 = vld [vmem:[%s1677_s30 + $0x10] sm:$0xff]   ;;  %s1067_s12 = sshll.u32 %s382_s28, 4  ;;  %s1049_s21 = scalar_lea.sflag [#allocation4], %s381_s27  ;;  %s1068_s12 = int_to_ptr.vmem [resolvable:$true] %s1067_s12 }
  0x1e   : > { %v423_v9 = vld [vmem:[%s1665_s19 + $0x28] sm:$0xff]  ;;  %v1464_v11 = vld [vmem:[%s1677_s30] sm:$0xff]   ;;  %v425_v15 = vld [vmem:[%s1665_s19 + $0x38] sm:$0xff]  ;;  %s1544_s0 = smov [#allocation3]  }
  0x1f   : > { %v1465_v12 = vld [vmem:[%s1677_s30 + $0x8] sm:$0xff]   ;;  %1299 = vmatprep.mubr.msk.bf16.mxu0 %vm610_vm1, %v1464_v11  ;;  %v424_v16 = vld [vmem:[%s1665_s19 + $0x30] sm:$0xff]  ;;  %v426_v18 = vld [vmem:[%s1665_s19 + $0x40] sm:$0xff]  ;;  %s1480_s29 = sshll.u32 %s1544_s0, 4  ;;  %s1481_s29 = int_to_ptr.vmem [resolvable:$false] %s1480_s29 }
  0x20   : > { %1300 = vmatmul.mubr.msk.bf16.vlgmr.msra.gmra.mrb[0].mxu0 %vm610_vm1, %v1465_v12  ;;  %v427_v17 = vld [vmem:[%s1665_s19 + $0x48] sm:$0xff]  ;;  %v1467_v19 = vld [vmem:[%s1677_s30 + $0x18] sm:$0xff]   ;;  %v1468_v20 = vld [vmem:[%s1677_s30 + $0x20] sm:$0xff]   ;;  %p1483_p1 = scmp.lt.s32.totalorder %s1068_s12, %s1481_s29 }
  0x21   : > { %444 = vperm.xlu1 %1461, %v421_v7   ;;  %438 = vperm.xlu0 %1460, %v419_v8   ;;  %v429_v21 = vld [vmem:[%s1665_s19 + $0x58] sm:$0xff]  ;;  %v428_v22 = vld [vmem:[%s1665_s19 + $0x50] sm:$0xff]  ;;  %v431_v23 = vld [vmem:[%s1665_s19 + $0x68] sm:$0xff] }
  0x22   : > { %1316 = vmatpush3.bf16.msra.mxu0 %v759_v13  ;;  %1303 = vmatprep.mubr.msk.bf16.mxu0 %vm610_vm1, %v1466_v14  ;;  %v430_v24 = vld [vmem:[%s1665_s19 + $0x60] sm:$0xff]  ;;  %v1469_v25 = vld [vmem:[%s1677_s30 + $0x28] sm:$0xff]   ;;  %v1470_v26 = vld [vmem:[%s1677_s30 + $0x30] sm:$0xff]  }
  0x23   : > { %v433_v27 = vld [vmem:[%s1665_s19 + $0x78] sm:$0xff]  ;;  %v432_v28 = vld [vmem:[%s1665_s19 + $0x70] sm:$0xff]  ;;  %v1237_v11 = vld [vmem:[%s1840_s5] ss:$0 sm:$0xff]  ;;  %s1794_s19 = scalar_lea.hbm %s1843_s8, %s1652_s26 }
  0x24   : > { %v1471_v30 = vld [vmem:[%s1677_s30 + $0x38] sm:$0xff]   ;;  %s1482_s30 = scalar_lea.vmem %s1481_s29, 32 }
  0x25   : > { %450 = vperm.xlu1 %1461, %v423_v9   ;;  %447 = vperm.xlu0 %1460, %v422_v10   ;;  %v1542_v10 = vmov 0.0|0.0  }
  0x26   : > { %1368 = vmatprep.subr.bf16.mxu1 %v1542_v10 }
  0x28   : > { %1304 = vmatmul.mubr.msk.bf16.gmra.mrb[4].mxu0 %vm610_vm1, %v1467_v19 }
  0x29   : > { %456 = vperm.xlu1 %1461, %v425_v15   ;;  %453 = vperm.xlu0 %1460, %v424_v16  }
  0x2a   : > { %1307 = vmatprep.mubr.msk.bf16.mxu0 %vm610_vm1, %v1468_v20 }
  0x2d   : > { %462 = vperm.xlu1 %1461, %v427_v17   ;;  %459 = vperm.xlu0 %1460, %v426_v18  }
  0x30   : > { %1308 = vmatmul.mubr.msk.bf16.gmra.mrb[8].mxu0 %vm610_vm1, %v1469_v25 }
  0x31   : > { %468 = vperm.xlu1 %1461, %v429_v21   ;;  %465 = vperm.xlu0 %1460, %v428_v22  }
  0x32   : > { %1311 = vmatprep.mubr.msk.bf16.mxu0 %vm610_vm1, %v1470_v26 }
  0x35   : > { %474 = vperm.xlu1 %1461, %v431_v23   ;;  %471 = vperm.xlu0 %1460, %v430_v24  }
  0x38   : > { %1312 = vmatmul.mubr.msk.bf16.gmra.mrb[12].mxu0 %vm610_vm1, %v1471_v30 }
  0x39   : > { %480 = vperm.xlu1 %1461, %v433_v27   ;;  %477 = vperm.xlu0 %1460, %v432_v28  }
  0x3d   : > { %901 = vperm.xlu0 %1460, %v898_v29  }
  0x9c   : > { %v442_v33 = vpop.permute.xlu1 %441  ;;  %v436_v34 = vpop.permute.xlu0 %435 }
  0x9d   : > { %vm484_vm2 = vcmp.eq.s32.totalorder %v1710_v32, %v442_v33  ;;  %vm482_vm3 = vcmp.eq.s32.totalorder %v1710_v32, %v436_v34 }
  0x9e   : > { %v1197_v38 = vsel %vm484_vm2, 1.0, %v1541_v37  ;;  %v1195_v39 = vsel %vm482_vm3, 1.0, %v1541_v37 }
  0xa0   : > { %v445_v35 = vpop.permute.xlu1 %444  ;;  %v439_v36 = vpop.permute.xlu0 %438 }
  0xa1   : > { %vm485_vm4 = vcmp.eq.s32.totalorder %v1710_v32, %v445_v35  ;;  %vm483_vm5 = vcmp.eq.s32.totalorder %v1710_v32, %v439_v36 }
  0xa2   : > { %v1198_v40 = vsel %vm485_vm4, 1.0, %v1541_v37  ;;  %v1196_v41 = vsel %vm483_vm5, 1.0, %v1541_v37  ;;  %vm1543_vm4 = vmmov 0   ;;  %vm1742_vm5 = vmpackc.low %vm610_vm1, %vm610_vm1 }
  0xa3   : > { %v531_v42 = vpack.c.bf16 %v1198_v40, %v1197_v38  ;;  %v530_v43 = vpack.c.bf16 %v1196_v41, %v1195_v39  ;;  %1365 = vmatprep.mubr.msk.f32.mxu1 %vm1543_vm4, %v1541_v37 }
  0xa4   : > { %v451_v44 = vpop.permute.xlu1 %450  ;;  %v448_v45 = vpop.permute.xlu0 %447 }
  0xa5   : > { %vm487_vm7 = vcmp.eq.s32.totalorder %v1710_v32, %v451_v44  ;;  %vm486_vm8 = vcmp.eq.s32.totalorder %v1710_v32, %v448_v45  ;;  %1317 = vmatprep.mubr.msk.bf16.mxu0 %vm732_vm6, %v530_v43 }
  0xa6   : > { %v1200_v46 = vsel %vm487_vm7, 1.0, %v1541_v37  ;;  %v1199_v47 = vsel %vm486_vm8, 1.0, %v1541_v37  ;;  %1318 = vmatmul.mubr.msk.bf16.vlgmr.msra.gmra.mrb[0].mxu0 %vm732_vm6, %v531_v42 }
  0xa7   : > { %v532_v48 = vpack.c.bf16 %v1200_v46, %v1199_v47 }
  0xa8   : > { %v457_v49 = vpop.permute.xlu1 %456  ;;  %v454_v50 = vpop.permute.xlu0 %453 }
  0xa9   : > { %vm489_vm9 = vcmp.eq.s32.totalorder %v1710_v32, %v457_v49  ;;  %vm488_vm10 = vcmp.eq.s32.totalorder %v1710_v32, %v454_v50  ;;  %1321 = vmatprep.mubr.msk.bf16.mxu0 %vm732_vm6, %v532_v48 }
  0xaa   : > { %v1202_v51 = vsel %vm489_vm9, 1.0, %v1541_v37  ;;  %v1201_v52 = vsel %vm488_vm10, 1.0, %v1541_v37 }
  0xab   : > { %v533_v53 = vpack.c.bf16 %v1202_v51, %v1201_v52 }
  0xac   : > { %v463_v54 = vpop.permute.xlu1 %462  ;;  %v460_v55 = vpop.permute.xlu0 %459 }
  0xad   : > { %vm491_vm11 = vcmp.eq.s32.totalorder %v1710_v32, %v463_v54  ;;  %vm490_vm12 = vcmp.eq.s32.totalorder %v1710_v32, %v460_v55 }
  0xae   : > { %v1204_v56 = vsel %vm491_vm11, 1.0, %v1541_v37  ;;  %v1203_v57 = vsel %vm490_vm12, 1.0, %v1541_v37  ;;  %1322 = vmatmul.mubr.msk.bf16.gmra.mrb[4].mxu0 %vm732_vm6, %v533_v53 }
  0xaf   : > { %v534_v58 = vpack.c.bf16 %v1204_v56, %v1203_v57 }
  0xb0   : > { %v469_v59 = vpop.permute.xlu1 %468  ;;  %v466_v60 = vpop.permute.xlu0 %465 }
  0xb1   : > { %vm493_vm13 = vcmp.eq.s32.totalorder %v1710_v32, %v469_v59  ;;  %vm492_vm14 = vcmp.eq.s32.totalorder %v1710_v32, %v466_v60  ;;  %1325 = vmatprep.mubr.msk.bf16.mxu0 %vm732_vm6, %v534_v58 }
  0xb2   : > { %v1206_v61 = vsel %vm493_vm13, 1.0, %v1541_v37  ;;  %v1205_v62 = vsel %vm492_vm14, 1.0, %v1541_v37 }
  0xb3   : > { %v535_v63 = vpack.c.bf16 %v1206_v61, %v1205_v62 }
  0xb4   : > { %v475_v0 = vpop.permute.xlu1 %474  ;;  %v472_v1 = vpop.permute.xlu0 %471 }
  0xb5   : > { %vm495_vm15 = vcmp.eq.s32.totalorder %v1710_v32, %v475_v0  ;;  %vm494_vm0 = vcmp.eq.s32.totalorder %v1710_v32, %v472_v1 }
  0xb6   : > { %v1208_v2 = vsel %vm495_vm15, 1.0, %v1541_v37  ;;  %v1207_v3 = vsel %vm494_vm0, 1.0, %v1541_v37  ;;  %1326 = vmatmul.mubr.msk.bf16.gmra.mrb[8].mxu0 %vm732_vm6, %v535_v63 }
  0xb7   : > { %v536_v4 = vpack.c.bf16 %v1208_v2, %v1207_v3 }
  0xb8   : > { %v481_v5 = vpop.permute.xlu1 %480  ;;  %v478_v6 = vpop.permute.xlu0 %477 }
  0xb9   : > { %vm497_vm2 = vcmp.eq.s32.totalorder %v1710_v32, %v481_v5  ;;  %vm496_vm3 = vcmp.eq.s32.totalorder %v1710_v32, %v478_v6  ;;  %1329 = vmatprep.mubr.msk.bf16.mxu0 %vm732_vm6, %v536_v4  ;;  %v897_v6 = vld [vmem:[%s1841_s6] sm:$0x1] }
  0xba   : > { %v1210_v7 = vsel %vm497_vm2, 1.0, %v1541_v37  ;;  %v1209_v8 = vsel %vm496_vm3, 1.0, %v1541_v37 }
  0xbb   : > { %v537_v9 = vpack.c.bf16 %v1210_v7, %v1209_v8  ;;  %v1036_v7 = vld [vmem:[%s407_s22] sm:$0x1]  ;;  %s1476_s22 = scalar_lea.vmem %s1068_s12, 16 }
  0xbc   : > { %p1477_p12 = scmp.ne.s32.totalorder %s1068_s12, %s1476_s22  ;;  %p1484_p2 = scmp.lt.s32.totalorder %s1482_s30, %s1476_s22 }
  0xbe   : > { %1330 = vmatmul.mubr.msk.bf16.gmra.mrb[12].mxu0 %vm732_vm6, %v537_v9  ;;  %vm1038_vm6 = vcmask 1040384   ;;  %v905_v9 = vshrl.u32 %v416_v31, 7  ;;  %p1478_p13 = pnand %p1477_p12, %p1641_p5  ;;  %p1485_p3 = por %p1484_p2, %p1483_p1 }
  0xbf   : > { %v1044_v8 = vsel %vm1038_vm6, %v1036_v7, 0.0 }
  0xc0   : > { %1045 = vadd.xlane.f32.xlu0 %v1044_v8  ;;  %p1479_p0 = pneg %p1478_p13 }
  0xc2   : > { %p1486_p4 = pnand %p1485_p3, %p1479_p0 }
 0x179   : > { %v1319_v12 = vpop.f32.mrb[0].mxu0 }
 0x17a   : > { %v867_v13 = vadd.f32 %v1319_v12, %v1237_v11  ;;  %v795_v14 = vpop.f32.mrb[1].mxu0 }
 0x17b   : > { %v865_v15 = vadd.f32 %v1237_v11, %v795_v14  ;;  %v1320_v16 = vpop.f32.mrb[2].mxu0 }
 0x17c   : > { %v868_v17 = vadd.f32 %v1320_v16, %v1237_v11  ;;  %v798_v18 = vpop.f32.mrb[3].mxu0  ;;  %v883_v20 = vmax.f32 %v867_v13, 0.0 }
 0x17d   : > { %v866_v19 = vadd.f32 %v1237_v11, %v798_v18  ;;  %v881_v22 = vmax.f32 %v865_v15, 0.0 }
 0x17e   : > { %v884_v21 = vmax.f32 %v868_v17, 0.0 }
 0x17f   : > { %v882_v23 = vmax.f32 %v866_v19, 0.0 }
 0x180   : > { %v1373_v24 = vpack.c.bf16 %v884_v21, %v883_v20 }
 0x181   : > { %v1369_v26 = vpack.c.bf16 %v882_v23, %v881_v22  ;;  %v1323_v27 = vpop.f32.mrb[4].mxu0 }
 0x182   : > { %v871_v28 = vadd.f32 %v1323_v27, %v1237_v11  ;;  %v811_v29 = vpop.f32.mrb[5].mxu0 }
 0x183   : > { %v869_v30 = vadd.f32 %v1237_v11, %v811_v29  ;;  %v1324_v32 = vpop.f32.mrb[6].mxu0  ;;  %1371 = vmatpush3.bf16.xpose.msk.msra.mxu1 %vm1742_vm5, %v1369_v26 }
 0x184   : > { %v872_v33 = vadd.f32 %v1324_v32, %v1237_v11  ;;  %v814_v34 = vpop.f32.mrb[7].mxu0  ;;  %1372 = vmatprep.subr.bf16.mxu1 %v1542_v10  ;;  %v887_v36 = vmax.f32 %v871_v28, 0.0 }
 0x185   : > { %v870_v35 = vadd.f32 %v1237_v11, %v814_v34  ;;  %v885_v38 = vmax.f32 %v869_v30, 0.0 }
 0x186   : > { %v888_v37 = vmax.f32 %v872_v33, 0.0 }
 0x187   : > { %v886_v39 = vmax.f32 %v870_v35, 0.0 }
 0x188   : > { %v1381_v40 = vpack.c.bf16 %v888_v37, %v887_v36 }
 0x189   : > { %v1377_v41 = vpack.c.bf16 %v886_v39, %v885_v38  ;;  %v1327_v42 = vpop.f32.mrb[8].mxu0 }
 0x18a   : > { %v875_v43 = vadd.f32 %v1327_v42, %v1237_v11  ;;  %v827_v44 = vpop.f32.mrb[9].mxu0 }
 0x18b   : > { %v873_v45 = vadd.f32 %v1237_v11, %v827_v44  ;;  %v1328_v46 = vpop.f32.mrb[10].mxu0  ;;  %1375 = vmatpush3.bf16.xpose.msk.msra.mxu1 %vm1742_vm5, %v1373_v24 }
 0x18c   : > { %v876_v47 = vadd.f32 %v1328_v46, %v1237_v11  ;;  %v830_v48 = vpop.f32.mrb[11].mxu0  ;;  %1376 = vmatprep.subr.bf16.mxu1 %v1542_v10  ;;  %v891_v50 = vmax.f32 %v875_v43, 0.0 }
 0x18d   : > { %v874_v49 = vadd.f32 %v1237_v11, %v830_v48  ;;  %v889_v52 = vmax.f32 %v873_v45, 0.0 }
 0x18e   : > { %v892_v51 = vmax.f32 %v876_v47, 0.0 }
 0x18f   : > { %v890_v53 = vmax.f32 %v874_v49, 0.0 }
 0x190   : > { %v1389_v54 = vpack.c.bf16 %v892_v51, %v891_v50 }
 0x191   : > { %v1385_v55 = vpack.c.bf16 %v890_v53, %v889_v52  ;;  %v1331_v56 = vpop.f32.mrb[12].mxu0 }
 0x192   : > { %v879_v57 = vadd.f32 %v1331_v56, %v1237_v11  ;;  %v843_v58 = vpop.f32.mrb[13].mxu0 }
 0x193   : > { %v877_v59 = vadd.f32 %v1237_v11, %v843_v58  ;;  %v1332_v60 = vpop.f32.mrb[14].mxu0  ;;  %1379 = vmatpush3.bf16.xpose.msk.msra.mxu1 %vm1742_vm5, %v1377_v41 }
 0x194   : > { %v880_v61 = vadd.f32 %v1332_v60, %v1237_v11  ;;  %v846_v62 = vpop.f32.mrb[15].mxu0  ;;  %1380 = vmatprep.subr.bf16.mxu1 %v1542_v10  ;;  %v895_v0 = vmax.f32 %v879_v57, 0.0 }
 0x195   : > { %v878_v63 = vadd.f32 %v1237_v11, %v846_v62  ;;  %v893_v2 = vmax.f32 %v877_v59, 0.0  ;;  %v902_v11 = vpop.permute.xlu0 %901 }
 0x196   : > { %v896_v1 = vmax.f32 %v880_v61, 0.0 }
 0x197   : > { %v894_v3 = vmax.f32 %v878_v63, 0.0 }
 0x198   : > { %v1397_v4 = vpack.c.bf16 %v896_v1, %v895_v0 }
 0x199   : > { %v1393_v5 = vpack.c.bf16 %v894_v3, %v893_v2  ;;  %v1046_v21 = vpop.xlane.xlu0 %1045 }
 0x19b   : > { %1383 = vmatpush3.bf16.xpose.msk.msra.mxu1 %vm1742_vm5, %v1381_v40 }
 0x19c   : > { %1384 = vmatprep.subr.bf16.mxu1 %v1542_v10 }
 0x1a3   : > { %1387 = vmatpush3.bf16.xpose.msk.msra.mxu1 %vm1742_vm5, %v1385_v55 }
 0x1a4   : > { %1388 = vmatprep.subr.bf16.mxu1 %v1542_v10 }
 0x1ab   : > { %1391 = vmatpush3.bf16.xpose.msk.msra.mxu1 %vm1742_vm5, %v1389_v54 }
 0x1ac   : > { %1392 = vmatprep.subr.bf16.mxu1 %v1542_v10 }
 0x1b3   : > { %1395 = vmatpush3.bf16.xpose.msk.msra.mxu1 %vm1742_vm5, %v1393_v5 }
 0x1b4   : > { %1396 = vmatprep.subr.bf16.mxu1 %v1542_v10  ;;  %v906_v10 = vsub.s32 0, %v905_v9 }
 0x1b6   : > { %v907_v12 = vrot.slane %v902_v11, %v906_v10 }
 0x1bb   : > { %1399 = vmatpush3.bf16.xpose.msk.msra.mxu1 %vm1742_vm5, %v1397_v4 }
 0x1c2   : > { %1366 = vmatmul.mubr.msk.f32.vlgmr.msra.gmra.mrb[0].mxu1 %vm610_vm1, %v897_v6  ;;  %vm1042_vm1 = vcmask 0  }
 0x1c3   : > { %1047 = vst.msk [vmem:[%s413_s11] sm:$0x1] %vm1042_vm1, %v1046_v21 }
 0x295   : > { %v1025_v13 = vpop.f32.mrb[0].mxu1 }
 0x296   : > { %v1026_v14 = vadd.f32 %v1025_v13, %v907_v12  ;;  %v1367_v15 = vpop.f32.mrb[1].mxu1 }
 0x298   : > { %v1255_v16 = vmul.f32 -1.442695, %v1026_v14 }
 0x29a   : > { %1472 = vpow2.f32 %v1255_v16 }
 0x2a4   : > { %v1473_v17 = vpop.eup %1472 }
 0x2a5   : > { %v1032_v18 = vadd.f32 1.0, %v1473_v17 }
 0x2a7   : > { %1474 = vrcp.f32 %v1032_v18 }
 0x2b1   : > { %v1475_v19 = vpop.eup %1474 }
 0x2b2   : > { %v1037_v20 = vmul.f32 %v1475_v19, %v1036_v7  ;;  %1035 = vst [vmem:[%s382_s28] sm:$0x1] %v1475_v19 }
 0x2b4   : > { %v1039_v31 = vsel %vm1038_vm6, %v1037_v20, 0.0 }
 0x2b5   : > { %1040 = vadd.xlane.f32.xlu1 %v1039_v31 }
 0x2b6   : > { %1489 = shalt.err (!%p1486_p4)
}
 0x2b7   : > { %s1490_s26 = scalar_lea.hbm %s1794_s19, 16  ;;  %s1494_s0 = scalar_lea.hbm %s1843_s8, 48 }
 0x2b8   : > { %p1491_p7 = scmp.ne.s32.totalorder %s1794_s19, %s1490_s26  ;;  %p1495_p10 = scmp.lt.u32.totalorder %s1794_s19, %s1843_s8 }
 0x2b9   : > { %p1496_p11 = scmp.lt.u32.totalorder %s1494_s0, %s1490_s26  ;;  %p1498_p13 = scmp.lt.u32.totalorder %s1490_s26, %s1794_s19 }
 0x2ba   : > { %p1492_p8 = pnand %p1491_p7, %p1641_p5 }
 0x2bb   : > { %p1497_p12 = por %p1496_p11, %p1495_p10 }
 0x2bc   : > { %p1493_p9 = pneg %p1492_p8 }
 0x2bd   : > { %p1499_p0 = por %p1498_p13, %p1497_p12 }
 0x2bf   : > { %p1500_p1 = pnand %p1499_p0, %p1493_p9 }
 0x2c1   : > { %1503 = shalt.err (!%p1500_p1)
}
 0x2c2   : > { %1417 = dma.vmem_to_hbm [thread:$0]  (%p1641_p5), %s1068_s12, 16, %s1794_s19, %s1049_s21  }
 0x2c3   : > { %s410_s29 = scalar_lea.vmem %s1844_s9, %s1857_s7 }
 0x342   : > { %v1041_v22 = vpop.xlane.xlu1 %1040 }
 0x343   : > { %1043 = vst.msk [vmem:[%s410_s29] sm:$0x1] %vm1042_vm1, %v1041_v22 }
 0x344 PF: > { %p1423_p2 = scmp.ge.s32.totalorder %s1538_s18, 2  ;;  %s1085_s30 = sand.u32 1, %s1526_s15  }
 0x345   : > { %s1086_s26 = scalar_lea.sflag [#allocation4], %s1085_s30 }
 0x346   : > { %p1420_p3 = pnand %p1423_p2, %p1645_p6 }
 0x348   : > { %1521 = dma.done.wait (!%p1420_p3), %s1086_s26, 16  }
 0x349   : > { %1523 = vsyncadd (!%p1420_p3), %s1086_s26, 4294967280  ;;  %p23_p5 = scmp.ge.s32.totalorder %s1628_s20, 5   ;;  %s1852_s15 = smov %s1530_s16 }
 0x34a   : > { %s1853_s16 = smov %s1534_s17  ;;  %s1854_s17 = smov %s1639_s23 }
 0x34b   : > { %s1855_s18 = smov %s1628_s20  ;;  %25 = sbr.rel (!%p23_p5) target bundleno = 6 (0x6), region = 117 }
 0x352   :  { %1102 = vsyncpa [#allocation4], 1 }
 0x353   :  { %1104 = vsyncpa [#allocation4 + $0x1], 1 }

</bundles_post_ra>
